<compile_context>
chip_gen: v7x
topology: tpu7x:2x2x1
jax: 0.10.0
libtpu: 0.0.40
codegen_flags: <defaults>
</compile_context>

<pallas_src>
import jax
import jax.numpy as jnp
import numpy as np
from jax.experimental import pallas as pl
from jax.experimental.pallas import tpu as pltpu


def attention_mil_kernel(x_ref, w1_ref, b1_ref, wts_ref, bts_ref,
                         wa_ref, bat_ref, wc_ref, bc_ref,
                         out_ref, a_ref):
    b_blk, n, input_dim = x_ref.shape
    attention_dim, branches = wa_ref.shape
    hidden_dim = w1_ref.shape[1]

    # Fold the B_BLK bags into the MXU M dimension (instances are independent
    # through the per-instance projections).
    x = x_ref[...].reshape(b_blk * n, input_dim)               # bf16

    # feature_projection: Linear -> ReLU (bf16 operands, f32 accumulation).
    # TODO(synk): Dropout(p=0.25) implemented as eval-mode identity (no
    # deterministic training-mode semantics for this forward pass).
    h = jnp.maximum(
        jnp.dot(x, w1_ref[...], preferred_element_type=jnp.float32)
        + b1_ref[...], 0.0)                                    # (B*N, hidden) f32

    # Fused gated-attention projections: one (hidden, 2*attn) MXU matmul,
    # then slice into the tanh / sigmoid halves.
    # TODO(synk): if attention_dim grows toward 128+, pad each half to a
    # lane-tile boundary (or keep two separate matmuls) so the mid-vreg slice
    # below does not force cross-lane traffic.
    z = (jnp.dot(h.astype(jnp.bfloat16), wts_ref[...],
                 preferred_element_type=jnp.float32)
         + bts_ref[...])                                       # (B*N, 2*attn) f32
    gated = (jnp.tanh(z[:, :attention_dim])
             * jax.nn.sigmoid(z[:, attention_dim:]))           # (B*N, attn) f32

    # Attention logits, laid out (B_BLK, branches, N): softmax reduces over
    # the lane axis (N) and the attention store is lane-dense over N.
    logits_flat = jnp.dot(gated.astype(jnp.bfloat16), wa_ref[...],
                          preferred_element_type=jnp.float32)  # (B*N, branches)
    logits = (jnp.swapaxes(logits_flat.reshape(b_blk, n, branches), 1, 2)
              + bat_ref[...])                                  # (B, br, N)

    m = jnp.max(logits, axis=-1, keepdims=True)
    e = jnp.exp(logits - m)
    s = jnp.sum(e, axis=-1, keepdims=True)
    a_soft = e / s                                             # exact softmax
    a_ref[...] = a_soft                                        # (B, br, N) slab

    # Pooling: M = A @ H per bag, (B, br, N) x (B, N, hidden) -> (B, br, hidden)
    h3 = h.reshape(b_blk, n, hidden_dim).astype(jnp.bfloat16)
    m_pooled = jnp.einsum('pbn,pnh->pbh', a_soft.astype(jnp.bfloat16), h3,
                          preferred_element_type=jnp.float32)

    # Classifier: branch-major flatten (== torch M.view(-1)) then a single MXU
    # contraction over K = branches*hidden.
    m_flat = m_pooled.reshape(b_blk, branches * hidden_dim).astype(jnp.bfloat16)
    out = (jnp.dot(m_flat, wc_ref[...], preferred_element_type=jnp.float32)
           + bc_ref[...])                                      # (B, C)
    out_ref[...] = out[None]                                   # (1, B, C) slab


def _pick_bag_block(num_bags):
    """Largest bag block that keeps >= 2 grid steps (both v7x TensorCores busy)."""
    if num_bags <= 1:
        return max(num_bags, 1)
    best = 1
    for cand in range(1, num_bags + 1):
        if num_bags % cand == 0 and num_bags // cand >= 2:
            best = cand
    return best


def attention_mil_forward(x, params, b_blk=None):
    """Batched forward over a stack of bags.

    x: (num_bags, N, input_dim) f32
    Returns: out (num_bags, num_classes) f32, A (num_bags, branches, N) f32.
    """
    (w1, b1, wt, bt, ws, bs, wa, ba, wc, bc) = params
    num_bags, N, input_dim = x.shape
    hidden_dim = w1.shape[1]
    attention_dim, branches = wa.shape
    num_classes = wc.shape[1]

    if b_blk is None:
        b_blk = _pick_bag_block(num_bags)
    assert num_bags % b_blk == 0
    grid_len = num_bags // b_blk

    # Host-side (free) re-layout / dtype prep: bf16 matmul operands (halves
    # the x DMA bytes, MXU-native on v6e/v7x), f32 biases (added to f32 acc).
    x_bf = x.astype(jnp.bfloat16)
    w1_bf = w1.astype(jnp.bfloat16)
    wts_bf = jnp.concatenate([wt, ws], axis=1).astype(jnp.bfloat16)  # (hid, 2*attn)
    bts = jnp.concatenate([bt, bs], axis=1)                          # (1, 2*attn) f32
    wa_bf = wa.astype(jnp.bfloat16)                                  # (attn, br)
    ba_t = ba.reshape(branches, 1)                                   # (br, 1) f32
    wc_bf = wc.astype(jnp.bfloat16)                                  # (br*hid, C)

    def const_spec(shape):
        # Constant index map -> weights stay VMEM-resident across grid steps.
        # TODO(synk): at production weight sizes add pipeline_mode=pl.Buffered(1)
        # so resident weights are single-buffered (matters under v7x 64 MiB VMEM).
        return pl.BlockSpec(shape, lambda g, _nd=len(shape): (0,) * _nd)

    flops_per_bag = (2 * N * input_dim * hidden_dim
                     + 2 * N * hidden_dim * 2 * attention_dim
                     + 2 * N * attention_dim * branches
                     + 2 * branches * N * hidden_dim
                     + 2 * branches * hidden_dim * num_classes)
    transc_per_bag = 2 * N * attention_dim + branches * N
    weight_bytes = (2 * (w1_bf.size + wts_bf.size + wa_bf.size + wc_bf.size)
                    + 4 * (b1.size + bts.size + ba_t.size + bc.size))
    bytes_accessed = (int(x_bf.size) * 2 + int(weight_bytes)
                      + num_bags * (num_classes + branches * N) * 4)

    out, a_soft = pl.pallas_call(
        attention_mil_kernel,
        grid=(grid_len,),
        in_specs=[
            pl.BlockSpec((b_blk, N, input_dim), lambda g: (g, 0, 0)),  # bag block
            const_spec(w1_bf.shape), const_spec(b1.shape),
            const_spec(wts_bf.shape), const_spec(bts.shape),
            const_spec(wa_bf.shape), const_spec(ba_t.shape),
            const_spec(wc_bf.shape), const_spec(bc.shape),
        ],
        out_specs=(
            pl.BlockSpec((1, b_blk, num_classes), lambda g: (g, 0, 0)),
            pl.BlockSpec((b_blk, branches, N), lambda g: (g, 0, 0)),
        ),
        out_shape=(
            jax.ShapeDtypeStruct((grid_len, b_blk, num_classes), jnp.float32),
            jax.ShapeDtypeStruct((num_bags, branches, N), jnp.float32),
        ),
        compiler_params=pltpu.CompilerParams(
            dimension_semantics=("parallel",)),
        cost_estimate=pl.CostEstimate(
            flops=num_bags * flops_per_bag,
            transcendentals=num_bags * transc_per_bag,
            bytes_accessed=int(bytes_accessed)),
    )(x_bf, w1_bf, b1, wts_bf, bts, wa_bf, ba_t, wc_bf, bc)

    return out.reshape(num_bags, num_classes), a_soft


def attention_mil_forward_single(x, params):
    """Single-bag forward matching the PyTorch module's return shapes:
    out (num_classes,), A (branches, N)."""
    out, a = attention_mil_forward(x[None], params)
    return out[0], a[0]


def attention_mil_reference(x, params):
    """Pure-JAX f32 reference of the PyTorch forward (eval mode)."""
    (w1, b1, wt, bt, ws, bs, wa, ba, wc, bc) = params
    h = jnp.maximum(x @ w1 + b1, 0.0)
    a = (jnp.tanh(h @ wt + bt) * jax.nn.sigmoid(h @ ws + bs)) @ wa + ba
    a = jax.nn.softmax(a.T, axis=1)                            # (branches, N)
    m = a @ h                                                  # (branches, hidden)
    out = m.reshape(-1) @ wc + bc.reshape(-1)
    return out, a


def init_params(key, input_dim, hidden_dim, attention_dim, num_classes, branches):
    """Deterministic init mimicking nn.Linear default (uniform +-1/sqrt(fan_in))."""
    def linear(k, fan_in, fan_out):
        kw, kb = jax.random.split(k)
        bound = 1.0 / jnp.sqrt(float(fan_in))
        w = jax.random.uniform(kw, (fan_in, fan_out), jnp.float32, -bound, bound)
        b = jax.random.uniform(kb, (1, fan_out), jnp.float32, -bound, bound)
        return w, b

    k1, k2, k3, k4, k5 = jax.random.split(key, 5)
    w1, b1 = linear(k1, input_dim, hidden_dim)
    wt, bt = linear(k2, hidden_dim, attention_dim)
    ws, bs = linear(k3, hidden_dim, attention_dim)
    wa, ba = linear(k4, attention_dim, branches)
    wc, bc = linear(k5, hidden_dim * branches, num_classes)
    return (w1, b1, wt, bt, ws, bs, wa, ba, wc, bc)


if __name__ == "__main__":
    key = jax.random.PRNGKey(0)

    configs = [
        # (num_bags, N, input_dim, hidden, attn, num_classes, branches)
        (4, 8, 32, 32, 32, 3, 1),
        (2, 8, 32, 32, 32, 3, 2),   # exercises the branches > 1 path
    ]

    last_x, last_params = None, None
    for (num_bags, N, input_dim, hidden_dim, attention_dim,
         num_classes, branches) in configs:
        kx, kp, key = jax.random.split(key, 3)
        x = jax.random.normal(kx, (num_bags, N, input_dim), jnp.float32)
        params = init_params(kp, input_dim, hidden_dim, attention_dim,
                             num_classes, branches)
        last_x, last_params = x, params

        out, A = attention_mil_forward(x, params)
        jax.block_until_ready((out, A))
        assert out.shape == (num_bags, num_classes)
        assert A.shape == (num_bags, branches, N)

        # bf16 MXU operands (with f32 accumulation) bound accuracy vs. the
        # pure-f32 reference to ~1e-2; the tolerance reflects that choice.
        for i in range(num_bags):
            ref_out, ref_a = attention_mil_reference(x[i], params)
            np.testing.assert_allclose(out[i], ref_out, rtol=3e-2, atol=3e-2)
            np.testing.assert_allclose(A[i], ref_a, rtol=3e-2, atol=3e-2)

    # Single-bag path returns PyTorch-shaped results (out: (C,), A: (br, N)).
    out1, A1 = attention_mil_forward_single(last_x[0], last_params)
    jax.block_until_ready((out1, A1))
    assert out1.shape == (configs[-1][5],)
    assert A1.shape == (configs[-1][6], configs[-1][1])

    print("KERNEL_OK")
</pallas_src>

<mosaic_0001>
module attributes {stable_mosaic.version = 11 : i64} {
  func.func @attention_mil_kernel(%arg0: i32, %arg1: memref<2x8x32xbf16, #tpu.memory_space<vmem>>, %arg2: memref<32x32xbf16, #tpu.memory_space<vmem>>, %arg3: memref<1x32xf32, #tpu.memory_space<vmem>>, %arg4: memref<32x64xbf16, #tpu.memory_space<vmem>>, %arg5: memref<1x64xf32, #tpu.memory_space<vmem>>, %arg6: memref<32x1xbf16, #tpu.memory_space<vmem>>, %arg7: memref<1x1xf32, #tpu.memory_space<vmem>>, %arg8: memref<32x3xbf16, #tpu.memory_space<vmem>>, %arg9: memref<1x3xf32, #tpu.memory_space<vmem>>, %arg10: memref<1x2x3xf32, #tpu.memory_space<vmem>>, %arg11: memref<2x1x8xf32, #tpu.memory_space<vmem>>) attributes {dimension_semantics = [#tpu.dimension_semantics<parallel>], iteration_bounds = array<i64: 2>, scalar_prefetch = 0 : i64, scratch_operands = 0 : i64, tpu.core_type = #tpu.core_type<tc>, window_params = [{transform_indices = @transform_0, window_bounds = array<i64: 2, 8, 32>}, {pipeline_mode = #tpu.pipeline_mode<synchronous>, transform_indices = @transform_1, window_bounds = array<i64: 32, 32>}, {pipeline_mode = #tpu.pipeline_mode<synchronous>, transform_indices = @transform_2, window_bounds = array<i64: 1, 32>}, {pipeline_mode = #tpu.pipeline_mode<synchronous>, transform_indices = @transform_3, window_bounds = array<i64: 32, 64>}, {pipeline_mode = #tpu.pipeline_mode<synchronous>, transform_indices = @transform_4, window_bounds = array<i64: 1, 64>}, {pipeline_mode = #tpu.pipeline_mode<synchronous>, transform_indices = @transform_5, window_bounds = array<i64: 32, 1>}, {pipeline_mode = #tpu.pipeline_mode<synchronous>, transform_indices = @transform_6, window_bounds = array<i64: 1, 1>}, {pipeline_mode = #tpu.pipeline_mode<synchronous>, transform_indices = @transform_7, window_bounds = array<i64: 32, 3>}, {pipeline_mode = #tpu.pipeline_mode<synchronous>, transform_indices = @transform_8, window_bounds = array<i64: 1, 3>}, {transform_indices = @transform_9, window_bounds = array<i64: 1, 2, 3>}, {transform_indices = @transform_10, window_bounds = array<i64: 2, 1, 8>}]} {
    %c0 = arith.constant 0 : index
    %c0_0 = arith.constant 0 : index
    %c0_1 = arith.constant 0 : index
    %0 = vector.load %arg1[%c0, %c0_0, %c0_1] : memref<2x8x32xbf16, #tpu.memory_space<vmem>>, vector<2x8x32xbf16>
    %1 = vector.shape_cast %0 : vector<2x8x32xbf16> to vector<16x32xbf16>
    %c0_2 = arith.constant 0 : index
    %c0_3 = arith.constant 0 : index
    %2 = vector.load %arg2[%c0_2, %c0_3] : memref<32x32xbf16, #tpu.memory_space<vmem>>, vector<32x32xbf16>
    %cst = arith.constant dense<0.000000e+00> : vector<16x32xf32>
    %3 = tpu.matmul %1, %2, %cst {dimension_numbers = #tpu.dot_dimension_numbers<[1], [0], [0], [1], [0, 0, 1, 1], [], []>} : vector<16x32xbf16>, vector<32x32xbf16>, vector<16x32xf32> -> vector<16x32xf32>
    %c0_4 = arith.constant 0 : index
    %c0_5 = arith.constant 0 : index
    %4 = vector.load %arg3[%c0_4, %c0_5] : memref<1x32xf32, #tpu.memory_space<vmem>>, vector<1x32xf32>
    %5 = vector.broadcast %4 : vector<1x32xf32> to vector<16x32xf32>
    %6 = arith.addf %3, %5 : vector<16x32xf32>
    %cst_6 = arith.constant 0.000000e+00 : f32
    %7 = vector.broadcast %cst_6 : f32 to vector<16x32xf32>
    %8 = arith.maximumf %6, %7 : vector<16x32xf32>
    %9 = arith.truncf %8 : vector<16x32xf32> to vector<16x32xbf16>
    %c0_7 = arith.constant 0 : index
    %c0_8 = arith.constant 0 : index
    %10 = vector.load %arg4[%c0_7, %c0_8] : memref<32x64xbf16, #tpu.memory_space<vmem>>, vector<32x64xbf16>
    %cst_9 = arith.constant dense<0.000000e+00> : vector<16x64xf32>
    %11 = tpu.matmul %9, %10, %cst_9 {dimension_numbers = #tpu.dot_dimension_numbers<[1], [0], [0], [1], [0, 0, 1, 1], [], []>} : vector<16x32xbf16>, vector<32x64xbf16>, vector<16x64xf32> -> vector<16x64xf32>
    %c0_10 = arith.constant 0 : index
    %c0_11 = arith.constant 0 : index
    %12 = vector.load %arg5[%c0_10, %c0_11] : memref<1x64xf32, #tpu.memory_space<vmem>>, vector<1x64xf32>
    %13 = vector.broadcast %12 : vector<1x64xf32> to vector<16x64xf32>
    %14 = arith.addf %11, %13 : vector<16x64xf32>
    %15 = vector.extract_strided_slice %14 {offsets = [0, 0], sizes = [16, 32], strides = [1, 1]} : vector<16x64xf32> to vector<16x32xf32>
    %16 = math.tanh %15 : vector<16x32xf32>
    %17 = vector.extract_strided_slice %14 {offsets = [0, 32], sizes = [16, 32], strides = [1, 1]} : vector<16x64xf32> to vector<16x32xf32>
    %18 = arith.negf %17 : vector<16x32xf32>
    %19 = math.exp %18 : vector<16x32xf32>
    %cst_12 = arith.constant 1.000000e+00 : f32
    %20 = vector.broadcast %cst_12 : f32 to vector<16x32xf32>
    %21 = arith.addf %20, %19 : vector<16x32xf32>
    %22 = arith.divf %20, %21 : vector<16x32xf32>
    %23 = arith.mulf %16, %22 : vector<16x32xf32>
    %24 = arith.truncf %23 : vector<16x32xf32> to vector<16x32xbf16>
    %c0_13 = arith.constant 0 : index
    %c0_14 = arith.constant 0 : index
    %25 = vector.load %arg6[%c0_13, %c0_14] : memref<32x1xbf16, #tpu.memory_space<vmem>>, vector<32x1xbf16>
    %cst_15 = arith.constant dense<0.000000e+00> : vector<16x1xf32>
    %26 = tpu.matmul %24, %25, %cst_15 {dimension_numbers = #tpu.dot_dimension_numbers<[1], [0], [0], [1], [0, 0, 1, 1], [], []>} : vector<16x32xbf16>, vector<32x1xbf16>, vector<16x1xf32> -> vector<16x1xf32>
    %27 = vector.shape_cast %26 : vector<16x1xf32> to vector<2x8x1xf32>
    %28 = tpu.transpose %27, [0, 2, 1] : vector<2x8x1xf32> -> vector<2x1x8xf32>
    %c0_16 = arith.constant 0 : index
    %c0_17 = arith.constant 0 : index
    %29 = vector.load %arg7[%c0_16, %c0_17] : memref<1x1xf32, #tpu.memory_space<vmem>>, vector<1x1xf32>
    %30 = vector.shape_cast %29 : vector<1x1xf32> to vector<1x1x1xf32>
    %31 = vector.broadcast %30 : vector<1x1x1xf32> to vector<2x1x8xf32>
    %32 = arith.addf %28, %31 : vector<2x1x8xf32>
    %cst_18 = arith.constant dense<0xFF800000> : vector<2x1xf32>
    %33 = vector.multi_reduction <maximumf>, %32, %cst_18 [2] : vector<2x1x8xf32> to vector<2x1xf32>
    %34 = vector.shape_cast %33 : vector<2x1xf32> to vector<2x1x1xf32>
    %35 = vector.broadcast %34 : vector<2x1x1xf32> to vector<2x1x8xf32>
    %36 = arith.subf %32, %35 : vector<2x1x8xf32>
    %37 = math.exp %36 : vector<2x1x8xf32>
    %cst_19 = arith.constant dense<0.000000e+00> : vector<2x1xf32>
    %38 = vector.multi_reduction <add>, %37, %cst_19 [2] : vector<2x1x8xf32> to vector<2x1xf32>
    %39 = vector.shape_cast %38 : vector<2x1xf32> to vector<2x1x1xf32>
    %40 = vector.broadcast %39 : vector<2x1x1xf32> to vector<2x1x8xf32>
    %41 = arith.divf %37, %40 : vector<2x1x8xf32>
    %c0_20 = arith.constant 0 : index
    %c0_21 = arith.constant 0 : index
    %c0_22 = arith.constant 0 : index
    %42 = vector.load %arg11[%c0_20, %c0_21, %c0_22] : memref<2x1x8xf32, #tpu.memory_space<vmem>>, vector<2x1x8xf32>
    tpu.vector_store %arg11[%c0_20, %c0_21, %c0_22], %41 {strides = array<i32>} : memref<2x1x8xf32, #tpu.memory_space<vmem>>, vector<2x1x8xf32>,
    %43 = vector.shape_cast %8 : vector<16x32xf32> to vector<2x8x32xf32>
    %44 = arith.truncf %43 : vector<2x8x32xf32> to vector<2x8x32xbf16>
    %45 = arith.truncf %41 : vector<2x1x8xf32> to vector<2x1x8xbf16>
    "tpu.trace_start"() <{level = 10 : i32, message = "pbn,pnh->pbh"}> : () -> ()
    %cst_23 = arith.constant dense<0.000000e+00> : vector<2x1x32xf32>
    %46 = tpu.matmul %45, %44, %cst_23 {dimension_numbers = #tpu.dot_dimension_numbers<[2], [1], [1], [2], [0, 0, 0, 1, 1, 2], [0], [0]>} : vector<2x1x8xbf16>, vector<2x8x32xbf16>, vector<2x1x32xf32> -> vector<2x1x32xf32>
    "tpu.trace_stop"() : () -> ()
    %47 = vector.shape_cast %46 : vector<2x1x32xf32> to vector<2x32xf32>
    %48 = arith.truncf %47 : vector<2x32xf32> to vector<2x32xbf16>
    %c0_24 = arith.constant 0 : index
    %c0_25 = arith.constant 0 : index
    %49 = vector.load %arg8[%c0_24, %c0_25] : memref<32x3xbf16, #tpu.memory_space<vmem>>, vector<32x3xbf16>
    %cst_26 = arith.constant dense<0.000000e+00> : vector<2x3xf32>
    %50 = tpu.matmul %48, %49, %cst_26 {dimension_numbers = #tpu.dot_dimension_numbers<[1], [0], [0], [1], [0, 0, 1, 1], [], []>} : vector<2x32xbf16>, vector<32x3xbf16>, vector<2x3xf32> -> vector<2x3xf32>
    %c0_27 = arith.constant 0 : index
    %c0_28 = arith.constant 0 : index
    %51 = vector.load %arg9[%c0_27, %c0_28] : memref<1x3xf32, #tpu.memory_space<vmem>>, vector<1x3xf32>
    %52 = vector.broadcast %51 : vector<1x3xf32> to vector<2x3xf32>
    %53 = arith.addf %50, %52 : vector<2x3xf32>
    %54 = vector.shape_cast %53 : vector<2x3xf32> to vector<1x2x3xf32>
    %c0_29 = arith.constant 0 : index
    %c0_30 = arith.constant 0 : index
    %c0_31 = arith.constant 0 : index
    %55 = vector.load %arg10[%c0_29, %c0_30, %c0_31] : memref<1x2x3xf32, #tpu.memory_space<vmem>>, vector<1x2x3xf32>
    tpu.vector_store %arg10[%c0_29, %c0_30, %c0_31], %54 {strides = array<i32>} : memref<1x2x3xf32, #tpu.memory_space<vmem>>, vector<1x2x3xf32>,
    return
  }
  func.func @transform_0(%arg0: i32) -> (i32, i32, i32) {
    %c0_i32 = arith.constant 0 : i32
    %c0_i32_0 = arith.constant 0 : i32
    %c0_i32_1 = arith.constant 0 : i32
    return %arg0, %c0_i32, %c0_i32_0 : i32, i32, i32
  }
  func.func @transform_1(%arg0: i32) -> (i32, i32) {
    %c0_i32 = arith.constant 0 : i32
    %c0_i32_0 = arith.constant 0 : i32
    %c0_i32_1 = arith.constant 0 : i32
    return %c0_i32, %c0_i32_0 : i32, i32
  }
  func.func @transform_2(%arg0: i32) -> (i32, i32) {
    %c0_i32 = arith.constant 0 : i32
    %c0_i32_0 = arith.constant 0 : i32
    %c0_i32_1 = arith.constant 0 : i32
    return %c0_i32, %c0_i32_0 : i32, i32
  }
  func.func @transform_3(%arg0: i32) -> (i32, i32) {
    %c0_i32 = arith.constant 0 : i32
    %c0_i32_0 = arith.constant 0 : i32
    %c0_i32_1 = arith.constant 0 : i32
    return %c0_i32, %c0_i32_0 : i32, i32
  }
  func.func @transform_4(%arg0: i32) -> (i32, i32) {
    %c0_i32 = arith.constant 0 : i32
    %c0_i32_0 = arith.constant 0 : i32
    %c0_i32_1 = arith.constant 0 : i32
    return %c0_i32, %c0_i32_0 : i32, i32
  }
  func.func @transform_5(%arg0: i32) -> (i32, i32) {
    %c0_i32 = arith.constant 0 : i32
    %c0_i32_0 = arith.constant 0 : i32
    %c0_i32_1 = arith.constant 0 : i32
    return %c0_i32, %c0_i32_0 : i32, i32
  }
  func.func @transform_6(%arg0: i32) -> (i32, i32) {
    %c0_i32 = arith.constant 0 : i32
    %c0_i32_0 = arith.constant 0 : i32
    %c0_i32_1 = arith.constant 0 : i32
    return %c0_i32, %c0_i32_0 : i32, i32
  }
  func.func @transform_7(%arg0: i32) -> (i32, i32) {
    %c0_i32 = arith.constant 0 : i32
    %c0_i32_0 = arith.constant 0 : i32
    %c0_i32_1 = arith.constant 0 : i32
    return %c0_i32, %c0_i32_0 : i32, i32
  }
  func.func @transform_8(%arg0: i32) -> (i32, i32) {
    %c0_i32 = arith.constant 0 : i32
    %c0_i32_0 = arith.constant 0 : i32
    %c0_i32_1 = arith.constant 0 : i32
    return %c0_i32, %c0_i32_0 : i32, i32
  }
  func.func @transform_9(%arg0: i32) -> (i32, i32, i32) {
    %c0_i32 = arith.constant 0 : i32
    %c0_i32_0 = arith.constant 0 : i32
    %c0_i32_1 = arith.constant 0 : i32
    return %arg0, %c0_i32, %c0_i32_0 : i32, i32, i32
  }
  func.func @transform_10(%arg0: i32) -> (i32, i32, i32) {
    %c0_i32 = arith.constant 0 : i32
    %c0_i32_0 = arith.constant 0 : i32
    %c0_i32_1 = arith.constant 0 : i32
    return %arg0, %c0_i32, %c0_i32_0 : i32, i32, i32
  }
}

</mosaic_0001>

<bundles_post_ra>
// kernel: tpu_custom_call.1
= control target key start
LH: loop header
LB: loop body
LE: loop exit
PB: predicated region body
PF: predicated region fallthrough
CT: control target
= control target key end

     0   :  { %s1662_s0 = inlined_call_operand.vmem [shape: bf16[4,8,32], index: 0, kind: input, shape index: {}]   ;;  %s1663_s1 = inlined_call_operand.vmem [shape: bf16[32,32], index: 1, kind: input, shape index: {}]   ;;  %s1664_s2 = inlined_call_operand.hbm [shape: f32[1,32], index: 2, kind: input, shape index: {}]   ;;  %s1665_s3 = inlined_call_operand.vmem [shape: bf16[32,64], index: 3, kind: input, shape index: {}]   ;;  %s1666_s4 = inlined_call_operand.vmem [shape: f32[1,64], index: 4, kind: input, shape index: {}]   ;;  %s1667_s5 = inlined_call_operand.vmem [shape: bf16[32,1], index: 5, kind: input, shape index: {}]   ;;  %s1668_s6 = inlined_call_operand.<no memory space> [shape: f32[1,1], index: 6, kind: input, shape index: {}]   ;;  %s1669_s7 = inlined_call_operand.vmem [shape: bf16[32,3], index: 7, kind: input, shape index: {}]   ;;  %s1670_s8 = inlined_call_operand.vmem [shape: f32[1,3], index: 8, kind: input, shape index: {}]   ;;  %s1671_s9 = inlined_call_operand.hbm [shape: f32[2,2,3], index: 9, kind: output, shape index: {0}]   ;;  %s1672_s10 = inlined_call_operand.hbm [shape: f32[4,1,8], index: 10, kind: output, shape index: {1}]  }
   0x1   :  { %1678 = sst [smem:[#allocation12_spill]] %s1662_s0  ;;  %v16_v0 = vstv %s1668_s6 }
   0x2   :  { %1679 = sst [smem:[#allocation13_spill]] %s1663_s1  ;;  %17 = vst [vmem:[#allocation2] sm:$0x1] %v16_v0 }
   0x3   :  { %1680 = sst [smem:[#allocation14_spill]] %s1664_s2 }
   0x4   :  { %18 = vsyncpa [#allocation4], 0 }
   0x5   :  { %19 = vsyncpa [#allocation5], 0 }
   0x6   :  { %21 = vsyncpa [#allocation5 + $0x1], 0 }
   0x7   :  { %22 = vsyncpa [#allocation8], 0 }
   0x8   :  { %24 = vsyncpa [#allocation8 + $0x1], 0  ;;  %s1418_s15 = smov 0   ;;  %s1420_s16 = smov 0  }
   0x9   :  { %s1422_s17 = smov 0   ;;  %s1424_s18 = smov 0  }
   0xa LB: > { %s1439_s6 = sadd.s32 4294967295, %s1349_s18   ;;  %s1033_s19 = sadd.s32 4294967294, %s1349_s18   ;;  %s1349_s18 = sphi %s1424_s18, %s1698_s18   ;;  %s1345_s17 = sphi %s1422_s17, %s1697_s17   ;;  %s1341_s16 = sphi %s1420_s16, %s1696_s16   ;;  %s1337_s15 = sphi %s1418_s15, %s1695_s15  }
   0xb   : > { %s1443_s20 = sadd.s32 1, %s1349_s18   ;;  %s231_s21 = sadd.s32 1, %s1345_s17 }
   0xc   : > { %s228_s22 = ssub.s32 %s1349_s18, %s1443_s20  ;;  %p241_p0 = scmp.ne.s32.totalorder %s1345_s17, %s1341_s16 }
   0xd   : > { %p229_p1 = scmp.eq.s32.totalorder %s228_s22, 0  ;;  %p242_p2 = scmp.eq.s32.totalorder %s1439_s6, 1 }
   0xe   : > { %p247_p3 = scmp.ne.s32.totalorder %s1341_s16, %s1337_s15  ;;  %p248_p4 = scmp.eq.s32.totalorder %s1033_s19, 1 }
   0xf   : > { %s1454_s23 = scalar_select %p229_p1, %s1345_s17, %s231_s21  }
  0x10   : > { %p1456_p5 = por %p242_p2, %p241_p0  ;;  %p1460_p6 = por %p248_p4, %p247_p3 }
  0x11   : > { %p1034_p7 = scmp.ge.s32.totalorder %s1349_s18, 1  ;;  %p281_p8 = scmp.lt.s32.totalorder %s1349_s18, 3 }
  0x12   : > { %s1681_s24 = scalar_select %p1456_p5, 1, 0 }
  0x13   : > { %s1682_s25 = scalar_select %p1460_p6, 1, 0 }
  0x14   : > { %p1673_p9 = scmp.eq.s32.totalorder %s1439_s6, 0  ;;  %p1467_p10 = pnand %p1034_p7, %p281_p8 }
  0x15   : > { %s1351_s27 = smov [#allocation3]   ;;  %s1685_s2 = sld [smem:[#allocation14_spill]] }
  0x16   : > { %s1683_s26 = scalar_select %p1467_p10, 1, 0 }
  0x17   : > { %s297_s28 = sshll.u32 %s1351_s27, 4  ;;  %p1139_p11 = pneg %p1467_p10  ;;  %s298_s28 = int_to_ptr.vmem [resolvable:$true] %s297_s28 }
  0x19   : > { %p1475_p12 = pnand %p1673_p9, %p1139_p11 }
  0x1b   : > { %s1223_s12 = scalar_lea.hbm %s1685_s2, 16  ;;  %p1225_p0 = pneg %p1475_p12 }
  0x1c   : > { %p1224_p13 = scmp.ne.s32.totalorder %s1685_s2, %s1223_s12  ;;  %p1230_p3 = scmp.lt.u32.totalorder %s1223_s12, %s1685_s2 }
  0x1e   : > { %p1226_p1 = pnand %p1225_p0, %p1224_p13 }
  0x20   : > { %p1227_p2 = pneg %p1226_p1 }
  0x22   : > { %p1232_p4 = pnand %p1230_p3, %p1227_p2 }
  0x24   : > { %1235 = shalt.err (!%p1232_p4)
}
  0x25   : > { %s1236_s22 = scalar_lea.vmem %s298_s28, 16  ;;  %s1243_s27 = scalar_lea.vmem %s298_s28, 32 }
  0x26   : > { %p1237_p7 = scmp.ne.s32.totalorder %s298_s28, %s1236_s22  ;;  %p1244_p9 = scmp.lt.s32.totalorder %s298_s28, %s298_s28 }
  0x27   : > { %p1245_p6 = scmp.lt.s32.totalorder %s1243_s27, %s1236_s22 }
  0x28   : > { %p1239_p8 = pnand %p1237_p7, %p1225_p0 }
  0x29   : > { %p1246_p5 = por %p1245_p6, %p1244_p9 }
  0x2a   : > { %p1240_p11 = pneg %p1239_p8 }
  0x2c   : > { %p1247_p10 = pnand %p1246_p5, %p1240_p11 }
  0x2e   : > { %1250 = shalt.err (!%p1247_p10)
}
  0x2f   : > { %1142 = dma.hbm_to_vmem [thread:$0]  (!%p1475_p12), %s1685_s2, 16, %s298_s28, [#allocation4]  }
  0x30   : > { %p1686_p13 = scmp.ne.s32.totalorder %s1683_s26, 0 }
  0x31   : > { %p1687_p1 = scmp.eq.s32.totalorder (!%p1686_p13), %s1439_s6, 0 }
  0x32   : > { %337 = sbr.rel (%p1686_p13) target bundleno = 1765 (0x6e5), region = 56 }
  0x39   : > { %1324 = dma.done.wait (%p1687_p1), [#allocation4], 16   ;;  %p1688_p0 = pmov %p1687_p1 }
  0x3a   : > { %s1041_s12 = sshll.u32 %s1439_s6, 1  ;;  %v1352_v1 = vmov 0.0   ;;  %vm1353_vm0 = vmmov 0   ;;  %s1689_s1 = sld [smem:[#allocation13_spill]]  ;;  %vm418_vm1 = vcmask 261120   ;;  %v1197_v5 = vld [vmem:[%s1665_s3] sm:$0xff]   ;;  %v688_v51 = vlaneseq }
  0x3b   : > { %1326 = vsyncadd (%p1688_p0), [#allocation4], 4294967280  ;;  %1087 = vmatprep.subr.bf16.mxu0 %v1352_v1  ;;  %1091 = vmatprep.mubr.msk.bf16.mxu0 %vm1353_vm0, %v1352_v1  ;;  %p381_p5 = scmp.lt.s32.totalorder %s1041_s12, 3  ;;  %s1690_s0 = sld [smem:[#allocation12_spill]]  ;;  %v1198_v6 = vld [vmem:[%s1665_s3 + $0x8] sm:$0xff]   ;;  %vm727_vm2 = vcmask 1043456  }
  0x3c   : > { %1095 = vmatprep.subr.bf16.mxu1 %v1352_v1  ;;  %1099 = vmatprep.mubr.msk.bf16.mxu1 %vm1353_vm0, %v1352_v1  ;;  %v1043_v7 = vld [vmem:[#allocation3] ss:$0 sm:$0xff]  ;;  %v1048_v21 = vld [vmem:[%s1666_s4] ss:$0 sm:$0xff]  ;;  %v1200_v35 = vld [vmem:[%s1667_s5 + $0x8] sm:$0xff]   ;;  %v1354_v37 = vmov 0  }
  0x3d   : > { %s1700_s12 = smov (!%p381_p5, %s1041_s12), 3  ;;  %1096 = vmatpush3.bf16.msra.mxu1 %v1197_v5  ;;  %v1199_v31 = vld [vmem:[%s1667_s5] sm:$0xff]   ;;  %1192 = vset.pattern.permute.xlu1 %v1354_v37  ;;  %s1355_s21 = smov 96   ;;  %v689_v52 = vshrl.u32 %v688_v51, 7  ;;  %vm694_vm3 = vcmask 57344   ;;  %vm723_vm4 = vcmask 64512  }
  0x3e   : > { %s1042_s26 = sshll.u32 %s1700_s12, 2  ;;  %1097 = vmatprep.subr.bf16.mxu1 %v1352_v1  ;;  %v682_v36 = vld [vmem:[#allocation2] sm:$0x1]  ;;  %s1553_s22 = sand.u32 1, %s1341_s16   ;;  %vm835_vm5 = vcmask 1041409  }
  0x3f   : > { %685 = vperm.xlu1 %1192, %v682_v36   ;;  %v690_v53 = vsub.s32 0, %v689_v52  ;;  %s1676_s27 = sshll.u32 %s1553_s22, 1  ;;  %s1677_s29 = sshll.u32 %s1439_s6, 5 }
  0x40   : > { %v1194_v2 = vld [vmem:[%s1689_s1] sm:$0xff]   ;;  %v1195_v3 = vld [vmem:[%s1689_s1 + $0x8] sm:$0xff]   ;;  %s1558_s30 = scalar_lea.vmem [#allocation7], %s1676_s27  ;;  %s901_s11 = scalar_lea.sflag [#allocation8], %s1553_s22 }
  0x41   : > { %s384_s19 = scalar_lea.vmem %s1690_s0, %s1042_s26  ;;  %1088 = vmatpush3.bf16.msra.mxu0 %v1194_v2  ;;  %1098 = vmatpush3.bf16.msra.mxu1 %v1198_v6  ;;  %p1691_p9 = scmp.ne.s32.totalorder %s1681_s24, 0 }
  0x42   : > { %1089 = vmatprep.subr.bf16.mxu0 %v1352_v1  ;;  %v1196_v4 = vld [vmem:[%s384_s19] sm:$0xff]   ;;  %1111 = vmatprep.subr.bf16.mxu1 %v1352_v1  ;;  %s1580_s19 = scalar_lea.hbm %s1672_s10, %s1677_s29  ;;  %s1356_s26 = smov [#allocation7]  }
  0x43   : > { %s1255_s28 = sshll.u32 %s1356_s26, 4  ;;  %s1256_s28 = int_to_ptr.vmem [resolvable:$false] %s1255_s28 }
  0x44   : > { %s1257_s27 = scalar_lea.vmem %s1256_s28, 64 }
  0x45   : > { %1090 = vmatpush3.bf16.msra.mxu0 %v1195_v3 }
  0x46   : > { %1103 = vmatprep.subr.bf16.mxu0 %v1352_v1 }
  0x48   : > { %1092 = vmatmul.mubr.msk.bf16.vlgmr.msra.gmra.mrb[0].mxu0 %vm418_vm1, %v1196_v4 }
  0x49   : > { %1107 = vmatprep.mubr.msk.bf16.mxu0 %vm1353_vm0, %v1352_v1  ;;  %1104 = vmatpush3.bf16.msra.mxu0 %v1199_v31 }
  0x4a   : > { %1105 = vmatprep.subr.bf16.mxu0 %v1352_v1 }
  0x4d   : > { %1106 = vmatpush3.bf16.msra.mxu0 %v1200_v35 }
  0x4e   : > { %1117 = vmatprep.subr.bf16.mxu0 %v1352_v1 }
  0xbe   : > { %v686_v54 = vpop.permute.xlu1 %685 }
  0xbf   : > { %v691_v55 = vrot.slane %v686_v54, %v690_v53 }
 0x11b   : > { %v456_v8 = vpop.f32.mrb[0].mxu0 }
 0x11c   : > { %v457_v9 = vadd.f32 %v1043_v7, %v456_v8  ;;  %v1093_v10 = vpop.f32.mrb[1].mxu0 }
 0x11d   : > { %v459_v11 = vpop.f32.mrb[2].mxu0 }
 0x11e   : > { %v463_v12 = vmax.f32 %v457_v9, 0.0  ;;  %v460_v13 = vadd.f32 %v1043_v7, %v459_v11  ;;  %v1094_v14 = vpop.f32.mrb[3].mxu0 }
 0x120   : > { %v719_v15 = vpack.c.bf16 %v463_v12, %v463_v12  ;;  %v464_v16 = vmax.f32 %v460_v13, 0.0 }
 0x122   : > { %v465_v17 = vpack.c.bf16 %v464_v16, %v463_v12  ;;  %v720_v18 = vpack.c.bf16 %v464_v16, %v464_v16  ;;  %v729_v19 = vsel %vm727_vm2, %v719_v15, 0 }
 0x124   : > { %1100 = vmatmul.mubr.msk.bf16.vlgmr.msra.gmra.mrb[0].mxu1 %vm418_vm1, %v465_v17  ;;  %v775_v20 = vsel %vm727_vm2, %v720_v18, 0  ;;  %v1201_v17 = vld [vmem:[%s1669_s7] sm:$0xff]   ;;  %v1202_v18 = vld [vmem:[%s1669_s7 + $0x8] sm:$0xff]  }
 0x125   : > { %1112 = vmatpush3.bf16.msra.mxu1 %v729_v19  ;;  %1113 = vmatprep.mubr.msk.bf16.mxu1 %vm1353_vm0, %v1352_v1 }
 0x126   : > { %1123 = vmatprep.subr.bf16.mxu1 %v1352_v1 }
 0x1f7   : > { %v526_v22 = vpop.f32.mrb[0].mxu1 }
 0x1f8   : > { %v527_v23 = vadd.f32 %v1048_v21, %v526_v22  ;;  %v1101_v24 = vpop.f32.mrb[1].mxu1 }
 0x1f9   : > { %v529_v25 = vpop.f32.mrb[2].mxu1 }
 0x1fa   : > { %v1052_v26 = vmul.f32 -1.442695, %v527_v23  ;;  %v530_v27 = vadd.f32 %v1048_v21, %v529_v25  ;;  %v1102_v28 = vpop.f32.mrb[3].mxu1 }
 0x1fc   : > { %1203 = vpow2.f32 %v1052_v26  ;;  %v1053_v29 = vmul.f32 -1.442695, %v530_v27 }
 0x1fe   : > { %1205 = vpow2.f32 %v1053_v29 }
 0x206   : > { %v1204_v30 = vpop.eup %1203 }
 0x207   : > { %v541_v32 = vadd.f32 1.0, %v1204_v30 }
 0x208   : > { %v1206_v33 = vpop.eup %1205 }
 0x209   : > { %1207 = vrcp.f32 %v541_v32  ;;  %v542_v34 = vadd.f32 1.0, %v1206_v33 }
 0x20b   : > { %1209 = vrcp.f32 %v542_v34 }
 0x20c   : > { %1211 = vtanh.f32 %v527_v23 }
 0x20d   : > { %1213 = vtanh.f32 %v530_v27 }
 0x213   : > { %v1208_v38 = vpop.eup %1207 }
 0x214   : > { %549 = vrot.lane.b32.xlu0 %v1208_v38, %s1355_s21 }
 0x215   : > { %v1210_v39 = vpop.eup %1209 }
 0x216   : > { %v1212_v41 = vpop.eup %1211 }
 0x217   : > { %v1214_v42 = vpop.eup %1213 }
 0x218   : > { %551 = vrot.lane.b32.xlu0 %v1210_v39, %s1355_s21  ;;  %s927_s21 = sshll.u32 %s1558_s30, 4  ;;  %s1583_s21 = int_to_ptr.vmem [resolvable:$true] %s927_s21 }
 0x219   : > { %s1251_s12 = scalar_lea.vmem %s1583_s21, 32  ;;  %p1258_p2 = scmp.lt.s32.totalorder %s1583_s21, %s1256_s28 }
 0x21a   : > { %p1252_p6 = scmp.ne.s32.totalorder %s1583_s21, %s1251_s12  ;;  %p1259_p3 = scmp.lt.s32.totalorder %s1257_s27, %s1251_s12 }
 0x21c   : > { %p1253_p10 = pnand %p1252_p6, %p1691_p9  ;;  %p1260_p4 = por %p1259_p3, %p1258_p2 }
 0x21e   : > { %p1254_p12 = pneg %p1253_p10 }
 0x220   : > { %p1261_p7 = pnand %p1260_p4, %p1254_p12 }
 0x286   : > { %v550_v40 = vpop.permute.xlu0 %549 }
 0x287   : > { %v555_v44 = vmul.f32 %v1212_v41, %v550_v40 }
 0x28a   : > { %v552_v43 = vpop.permute.xlu0 %551 }
 0x28b   : > { %v556_v45 = vmul.f32 %v1214_v42, %v552_v43 }
 0x28d   : > { %v557_v46 = vpack.c.bf16 %v556_v45, %v555_v44 }
 0x28f   : > { %1108 = vmatmul.mubr.msk.bf16.vlgmr.msra.gmra.mrb[4].mxu0 %vm418_vm1, %v557_v46 }
 0x290   : > { %1118 = vmatpush3.bf16.msra.mxu0 %v775_v20  ;;  %1119 = vmatprep.mubr.msk.bf16.mxu0 %vm1353_vm0, %v1352_v1 }
 0x362   : > { %v611_v47 = vpop.f32.mrb[4].mxu0 }
 0x363   : > { %618 = vxpose.xlu0.b32.start.end [1/1] (short) (narrow) %v611_v47, 8  ;;  %v1109_v48 = vpop.f32.mrb[5].mxu0 }
 0x364   : > { %v614_v49 = vpop.f32.mrb[6].mxu0 }
 0x365   : > { %650 = vxpose.xlu1.b32.start.end [1/1] (short) (narrow) %v614_v49, 8  ;;  %v1110_v50 = vpop.f32.mrb[7].mxu0 }
 0x38c   : > { %1193 = vset.pattern.permute.xlu0 %v1354_v37 }
 0x3e3   : > { %v634_v56 = vpop.trf.xlu0 }
 0x3e4   : > { %v692_v57 = vadd.f32 %v691_v55, %v634_v56 }
 0x3e5   : > { %v666_v58 = vpop.trf.xlu1 }
 0x3e6   : > { %v693_v59 = vadd.f32 %v691_v55, %v666_v58  ;;  %v695_v60 = vsel %vm694_vm3, %v692_v57, -inf }
 0x3e7   : > { %696 = vmax.xlane.f32.xlu1 %v695_v60 }
 0x3e8   : > { %v698_v61 = vsel %vm694_vm3, %v693_v59, -inf }
 0x3e9   : > { %699 = vmax.xlane.f32.xlu0 %v698_v61 }
 0x474   : > { %v697_v62 = vpop.xlane.xlu1 %696 }
 0x475   : > { %v701_v63 = vsub.f32 %v692_v57, %v697_v62 }
 0x476   : > { %v700_v0 = vpop.xlane.xlu0 %699 }
 0x477   : > { %v703_v2 = vmul.f32 1.442695, %v701_v63  ;;  %v702_v3 = vsub.f32 %v693_v59, %v700_v0 }
 0x479   : > { %1215 = vpow2.f32 %v703_v2  ;;  %v705_v4 = vmul.f32 1.442695, %v702_v3 }
 0x47b   : > { %1217 = vpow2.f32 %v705_v4 }
 0x483   : > { %v1216_v5 = vpop.eup %1215 }
 0x484   : > { %v707_v6 = vsel %vm694_vm3, %v1216_v5, 0.0 }
 0x485   : > { %v1218_v7 = vpop.eup %1217  ;;  %708 = vadd.xlane.f32.xlu1 %v707_v6 }
 0x486   : > { %v710_v8 = vsel %vm694_vm3, %v1218_v7, 0.0 }
 0x487   : > { %711 = vadd.xlane.f32.xlu0 %v710_v8 }
 0x512   : > { %v709_v9 = vpop.xlane.xlu1 %708 }
 0x513   : > { %1219 = vrcp.f32 %v709_v9 }
 0x514   : > { %v712_v10 = vpop.xlane.xlu0 %711 }
 0x515   : > { %1221 = vrcp.f32 %v712_v10 }
 0x51d   : > { %v1220_v11 = vpop.eup %1219 }
 0x51e   : > { %v714_v12 = vmul.f32 %v1220_v11, %v1216_v5 }
 0x51f   : > { %v1222_v13 = vpop.eup %1221 }
 0x520   : > { %v716_v14 = vmul.f32 %v1222_v13, %v1218_v7  ;;  %v721_v15 = vpack.c.bf16 %v714_v12, %v714_v12  ;;  %717 = vst.msk [vmem:[%s1558_s30] sm:$0x1] %vm694_vm3, %v714_v12 }
 0x522   : > { %1114 = vmatmul.mubr.msk.bf16.vlgmr.msra.gmra.mrb[4].mxu1 %vm723_vm4, %v721_v15  ;;  %v722_v16 = vpack.c.bf16 %v716_v14, %v716_v14  ;;  %718 = vst.msk [vmem:[%s1558_s30 + $0x1] sm:$0x1] %vm694_vm3, %v716_v14 }
 0x523   : > { %1127 = vmatprep.mubr.msk.bf16.mxu1 %vm1353_vm0, %v1352_v1  ;;  %1124 = vmatpush3.bf16.msra.mxu1 %v1201_v17 }
 0x524   : > { %1120 = vmatmul.mubr.msk.bf16.vlgmr.msra.gmra.mrb[8].mxu0 %vm723_vm4, %v722_v16  ;;  %1125 = vmatprep.subr.bf16.mxu1 %v1352_v1 }
 0x527   : > { %1126 = vmatpush3.bf16.msra.mxu1 %v1202_v18 }
 0x5f5   : > { %v765_v19 = vpop.f32.mrb[4].mxu1 }
 0x5f6   : > { %v1115_v20 = vpop.f32.mrb[5].mxu1  ;;  %v817_v23 = vpack.c.bf16 %v765_v19, %v765_v19 }
 0x5f7   : > { %v768_v21 = vpop.f32.mrb[6].mxu1  ;;  %v811_v22 = vpop.f32.mrb[8].mxu0 }
 0x5f8   : > { %v818_v24 = vpack.c.bf16 %v811_v22, %v811_v22  ;;  %v1116_v25 = vpop.f32.mrb[7].mxu1  ;;  %v1121_v26 = vpop.f32.mrb[9].mxu0  ;;  %v832_v29 = vunpack.c.l.b16 %v817_v23 }
 0x5f9   : > { %v814_v27 = vpop.f32.mrb[10].mxu0 }
 0x5fa   : > { %v833_v1 = vunpack.c.l.b16 %v818_v24  ;;  %v1122_v28 = vpop.f32.mrb[11].mxu0 }
 0x5fc   : > { %v834_v30 = vrot.slane %v833_v1, 7 }
 0x5fe   : > { %v836_v31 = vsel %vm835_vm5, %v834_v30, %v832_v29 }
 0x5ff   : > { %v837_v32 = vpack.c.b16 %v836_v31, %v836_v31 }
 0x601   : > { %1128 = vmatmul.mubr.msk.bf16.vlgmr.msra.gmra.mrb[8].mxu1 %vm418_vm1, %v837_v32 }
 0x602   : > { %1264 = shalt.err (!%p1261_p7)
}
 0x603   : > { %s1265_s30 = scalar_lea.hbm %s1580_s19, 32  ;;  %s1269_s26 = scalar_lea.hbm %s1672_s10, 64 }
 0x604   : > { %p1266_p8 = scmp.ne.s32.totalorder %s1580_s19, %s1265_s30  ;;  %p1270_p1 = scmp.lt.u32.totalorder %s1580_s19, %s1672_s10 }
 0x605   : > { %p1271_p0 = scmp.lt.u32.totalorder %s1269_s26, %s1265_s30  ;;  %p1273_p6 = scmp.lt.u32.totalorder %s1265_s30, %s1580_s19 }
 0x606   : > { %p1267_p11 = pnand %p1266_p8, %p1691_p9 }
 0x607   : > { %p1272_p5 = por %p1271_p0, %p1270_p1 }
 0x608   : > { %p1268_p13 = pneg %p1267_p11 }
 0x609   : > { %p1274_p10 = por %p1273_p6, %p1272_p5 }
 0x60b   : > { %p1275_p12 = pnand %p1274_p10, %p1268_p13 }
 0x60d   : > { %1278 = shalt.err (!%p1275_p12)
}
 0x60e   : > { %s1357_s27 = smov 16   ;;  %s1358_s12 = smov 1   ;;  %v1059_v33 = vld [vmem:[%s1670_s8] ss:$0 sm:$0xff]  ;;  %vm893_vm6 = vcmask 17408  }
 0x60f   : > { %1136 = dma.vmem_to_hbm [thread:$0]  (%p1691_p9), %s1583_s21, 32, %s1580_s19, %s901_s11, %s1357_s27, %s1357_s27, %s1358_s12  }
 0x610   : > { %s1692_s30 = sshll.u32 %s1553_s22, 1  ;;  %s1693_s28 = sshll.u32 %s1439_s6, 5 }
 0x611   : > { %s372_s14 = scalar_lea.vmem [#allocation6], %s1692_s30  ;;  %s1619_s2 = scalar_lea.hbm %s1671_s9, %s1693_s28 }
 0x612   : > { %s914_s26 = sshll.u32 %s372_s14, 4  ;;  %s896_s19 = scalar_lea.sflag [#allocation5], %s1553_s22  ;;  %s1621_s26 = int_to_ptr.vmem [resolvable:$true] %s914_s26 }
 0x613   : > { %s1279_s21 = scalar_lea.vmem %s1621_s26, 32  ;;  %s1359_s6 = smov [#allocation6]  }
 0x614   : > { %p1280_p2 = scmp.ne.s32.totalorder %s1621_s26, %s1279_s21  ;;  %s1283_s11 = sshll.u32 %s1359_s6, 4  ;;  %s1284_s11 = int_to_ptr.vmem [resolvable:$false] %s1283_s11 }
 0x615   : > { %s1285_s0 = scalar_lea.vmem %s1284_s11, 64  ;;  %p1286_p7 = scmp.lt.s32.totalorder %s1621_s26, %s1284_s11 }
 0x616   : > { %p1281_p3 = pnand %p1280_p2, %p1691_p9  ;;  %p1287_p8 = scmp.lt.s32.totalorder %s1285_s0, %s1279_s21 }
 0x618   : > { %p1282_p4 = pneg %p1281_p3  ;;  %p1288_p11 = por %p1287_p8, %p1286_p7 }
 0x61a   : > { %p1289_p13 = pnand %p1288_p11, %p1282_p4 }
 0x6d4   : > { %v887_v34 = vpop.f32.mrb[8].mxu1 }
 0x6d5   : > { %v888_v35 = vadd.f32 %v1059_v33, %v887_v34  ;;  %v1129_v36 = vpop.f32.mrb[9].mxu1 }
 0x6d6   : > { %v890_v37 = vpop.f32.mrb[10].mxu1 }
 0x6d7   : > { %v1130_v38 = vpop.f32.mrb[11].mxu1  ;;  %894 = vst.msk [vmem:[%s372_s14] sm:$0x3] %vm893_vm6, %v888_v35 }
 0x6d8   : > { %1292 = shalt.err (!%p1289_p13)
}
 0x6d9   : > { %s1293_s1 = scalar_lea.hbm %s1619_s2, 32  ;;  %s1297_s12 = scalar_lea.hbm %s1671_s9, 64 }
 0x6da   : > { %p1294_p1 = scmp.ne.s32.totalorder %s1619_s2, %s1293_s1  ;;  %p1298_p6 = scmp.lt.u32.totalorder %s1619_s2, %s1671_s9 }
 0x6db   : > { %p1299_p10 = scmp.lt.u32.totalorder %s1297_s12, %s1293_s1  ;;  %p1301_p2 = scmp.lt.u32.totalorder %s1293_s1, %s1619_s2 }
 0x6dc   : > { %p1295_p0 = pnand %p1294_p1, %p1691_p9 }
 0x6dd   : > { %p1300_p12 = por %p1299_p10, %p1298_p6 }
 0x6de   : > { %p1296_p5 = pneg %p1295_p0 }
 0x6df   : > { %p1302_p3 = por %p1301_p2, %p1300_p12 }
 0x6e1   : > { %p1303_p4 = pnand %p1302_p3, %p1296_p5 }
 0x6e3   : > { %1306 = shalt.err (!%p1303_p4)
}
 0x6e4   : > { %1135 = dma.vmem_to_hbm [thread:$0]  (%p1691_p9), %s1621_s26, 32, %s1619_s2, %s896_s19  }
 0x6e5 PF: > { %p1152_p7 = scmp.ge.s32.totalorder %s1349_s18, 2  ;;  %s942_s30 = sand.u32 1, %s1337_s15  }
 0x6e6   : > { %p1694_p8 = scmp.ne.s32.totalorder %s1682_s25, 0  ;;  %s943_s14 = scalar_lea.sflag [#allocation5], %s942_s30 }
 0x6e8   : > { %p1144_p11 = pnand %p1152_p7, %p1694_p8 }
 0x6ea   : > { %1328 = dma.done.wait (!%p1144_p11), %s943_s14, 32  }
 0x6eb   : > { %1330 = vsyncadd (!%p1144_p11), %s943_s14, 4294967264  ;;  %s952_s28 = scalar_lea.sflag [#allocation8], %s942_s30 }
 0x6ec   : > { %1332 = dma.done.wait (!%p1144_p11), %s952_s28, 32  }
 0x6ed   : > { %1334 = vsyncadd (!%p1144_p11), %s952_s28, 4294967264  ;;  %p27_p9 = scmp.ge.s32.totalorder %s1443_s20, 4   ;;  %s1695_s15 = smov %s1341_s16 }
 0x6ee   : > { %s1696_s16 = smov %s1345_s17  ;;  %s1697_s17 = smov %s1454_s23 }
 0x6ef   : > { %s1698_s18 = smov %s1443_s20  ;;  %29 = sbr.rel (!%p27_p9) target bundleno = 10 (0xa), region = 113 }
 0x6f6   :  { %957 = vsyncpa [#allocation4], 1 }
 0x6f7   :  { %959 = vsyncpa [#allocation4 + $0x1], 1 }
 0x6f8   :  { %960 = vsyncpa [#allocation5], 1 }
 0x6f9   :  { %962 = vsyncpa [#allocation5 + $0x1], 1 }
 0x6fa   :  { %963 = vsyncpa [#allocation8], 1 }
 0x6fb   :  { %965 = vsyncpa [#allocation8 + $0x1], 1 }

</bundles_post_ra>
